<compile_context>
chip_gen: v5e
topology: v5e:2x2
jax: 0.10.0
libtpu: 0.0.40
codegen_flags: <defaults>
</compile_context>

<pallas_src>
import math

import jax
import jax.numpy as jnp
from jax.experimental import pallas as pl
from jax.experimental.pallas import tpu as pltpu

PAD_TOKEN = "<pad>"
UNKNOWN_TOKEN = "<unk>"
PAD_INDEX = 0

# Cap on how many sequence elements one pallas_call handles.  Each element is
# one kernel argument + one DMA descriptor, so chunking keeps the argument
# list, DMA bookkeeping and compile time bounded for very long sequences
# (collate batches are normally far below this).
_MAX_K_PER_CALL = 128


def _make_stack_kernel(row_offset, num_inputs, has_alias):
    """Build an HBM -> HBM stack kernel for one chunk of the sequence.

    Kernel ref layout:
      non-aliased (first chunk): (in_0, ..., in_{n-1}, out, sem)
      aliased (later chunks):    (prev_out, in_0, ..., in_{n-1}, out, sem)
        where prev_out and out are the SAME (K, L) HBM buffer
        (input_output_aliases={0: 0}); prev_out is only there to carry the
        already-written rows forward and is never touched.

    Each in_i is a (1, L) HBM ref that is DMA'd into row `row_offset + i` of
    the (K, L) output.  All copies are started back-to-back (overlapped by the
    DMA engines), then all are waited on.  No VMEM, no vregs, no arithmetic.
    """

    def kernel(*refs):
        base = 1 if has_alias else 0
        in_refs = refs[base:base + num_inputs]
        out_ref = refs[base + num_inputs]
        sem = refs[base + num_inputs + 1]

        copies = []
        for i, r in enumerate(in_refs):
            cp = pltpu.make_async_copy(
                r, out_ref.at[pl.ds(row_offset + i, 1), :], sem.at[i]
            )
            cp.start()
            copies.append(cp)
        for cp in copies:
            cp.wait()

    return kernel


def seq2batch_pallas(sequence, *, max_k_per_call=_MAX_K_PER_CALL):
    """Pallas equivalent of Transform.seq2batch: torch.stack(sequence, dim=0).

    Args:
        sequence: list/tuple of K equal-shape jnp arrays (typically 1-D of
            length L, per the collate-function contract).
        max_k_per_call: cap on sequence elements handled by one pallas_call.

    Returns:
        (K, *elem_shape) array, out[i] == sequence[i].
    """
    k = len(sequence)
    if k == 0:
        raise ValueError("seq2batch requires a non-empty sequence")
    first = sequence[0]
    elem_shape = tuple(first.shape)
    dtype = first.dtype
    for v in sequence:
        if tuple(v.shape) != elem_shape or v.dtype != dtype:
            raise ValueError("all sequence elements must share shape and dtype")

    # Present each element as a contiguous (1, L) slab: the DMA copies a full
    # row into the output with no layout change (reshape is metadata-only).
    l = max(1, math.prod(elem_shape))
    inputs = [v.reshape(1, l) for v in sequence]

    out = None
    for start in range(0, k, max_k_per_call):
        chunk = inputs[start:start + max_k_per_call]
        ck = len(chunk)
        has_alias = out is not None

        kernel = _make_stack_kernel(start, ck, has_alias)
        in_specs = [pl.BlockSpec(memory_space=pl.ANY) for _ in range(ck)]
        if has_alias:
            in_specs = [pl.BlockSpec(memory_space=pl.ANY)] + in_specs

        call = pl.pallas_call(
            kernel,
            out_shape=jax.ShapeDtypeStruct((k, l), dtype),
            in_specs=in_specs,
            out_specs=pl.BlockSpec(memory_space=pl.ANY),
            scratch_shapes=[pltpu.SemaphoreType.DMA((ck,))],
            input_output_aliases=({0: 0} if has_alias else {}),
        )
        out = call(out, *chunk) if has_alias else call(*chunk)

    return out.reshape((k,) + elem_shape)


class TransformPallas:
    """JAX/Pallas mirror of the PyTorch Transform base class."""

    def __init__(self):
        self.unknown_token = UNKNOWN_TOKEN
        self.pad_token = PAD_TOKEN
        self.pad_index = PAD_INDEX
        self.unknown_index = None

    def __call__(self, x):
        return self.transform(x)

    def transform(self, x):
        raise NotImplementedError()

    def inverse_transform(self, x):
        raise NotImplementedError()

    def seq2batch(self, sequence):
        return seq2batch_pallas(sequence)

    def batch_transform(self, texts):
        raise NotImplementedError


if __name__ == "__main__":
    key = jax.random.PRNGKey(0)

    # Primary test: 8 sequence elements, each a length-128 f32 vector.
    K, L = 8, 128
    K2, L2 = 5, 96
    keys = jax.random.split(key, K + K2)

    sequence = [jax.random.normal(keys[i], (L,), dtype=jnp.float32) for i in range(K)]

    tfm = TransformPallas()
    out = tfm.seq2batch(sequence)
    out = jax.block_until_ready(out)

    ref = jnp.stack(sequence)  # torch.stack semantics
    assert out.shape == (K, L), out.shape
    assert out.dtype == jnp.float32, out.dtype
    assert bool(jnp.array_equal(out, ref)), "mismatch vs jnp.stack reference"

    # Secondary test: non-multiple-of-128 length (pure byte copy, any L works).
    seq2 = [jax.random.normal(keys[K + i], (L2,), dtype=jnp.float32) for i in range(K2)]
    out2 = jax.block_until_ready(tfm.seq2batch(seq2))
    assert out2.shape == (K2, L2), out2.shape
    assert bool(jnp.array_equal(out2, jnp.stack(seq2))), "mismatch on (5, 96)"

    # Chunked path test: force tiny chunks (3, 3, 2) so the aliased multi-call
    # path (direct writes into one shared output, no concatenate) is exercised.
    out3 = jax.block_until_ready(seq2batch_pallas(sequence, max_k_per_call=3))
    assert out3.shape == (K, L), out3.shape
    assert bool(jnp.array_equal(out3, ref)), "mismatch on chunked path"

    print("KERNEL_OK")
</pallas_src>

<mosaic_0001>
module attributes {stable_mosaic.version = 11 : i64} {
  func.func @kernel(%arg0: memref<1x128xf32, #tpu.memory_space<any>>, %arg1: memref<1x128xf32, #tpu.memory_space<any>>, %arg2: memref<1x128xf32, #tpu.memory_space<any>>, %arg3: memref<1x128xf32, #tpu.memory_space<any>>, %arg4: memref<1x128xf32, #tpu.memory_space<any>>, %arg5: memref<1x128xf32, #tpu.memory_space<any>>, %arg6: memref<1x128xf32, #tpu.memory_space<any>>, %arg7: memref<1x128xf32, #tpu.memory_space<any>>, %arg8: memref<8x128xf32, #tpu.memory_space<any>>, %arg9: memref<8x!tpu.dma_semaphore, #tpu.memory_space<semaphore_mem>>) attributes {dimension_semantics = [], scalar_prefetch = 0 : i64, scratch_operands = 1 : i64, tpu.core_type = #tpu.core_type<tc>} {
    %c0_i32 = arith.constant 0 : i32
    %c0_i32_0 = arith.constant 0 : i32
    %c0_i32_1 = arith.constant 0 : i32
    %0 = tpu.memref_slice %arg8[%c0_i32_0, %c0_i32_1] : memref<8x128xf32, #tpu.memory_space<any>> -> memref<1x128xf32, #tpu.memory_space<any>>
    %1 = tpu.memref_slice %arg9[%c0_i32] : memref<8x!tpu.dma_semaphore, #tpu.memory_space<semaphore_mem>> -> memref<1x!tpu.dma_semaphore, #tpu.memory_space<semaphore_mem>>
    %2 = tpu.memref_squeeze %1 : memref<1x!tpu.dma_semaphore, #tpu.memory_space<semaphore_mem>> -> memref<!tpu.dma_semaphore, #tpu.memory_space<semaphore_mem>>
    tpu.enqueue_dma source(%arg0 : memref<1x128xf32, #tpu.memory_space<any>>) target(%0 : memref<1x128xf32, #tpu.memory_space<any>>) target_semaphore(%2 : memref<!tpu.dma_semaphore, #tpu.memory_space<semaphore_mem>>)
    %c1_i32 = arith.constant 1 : i32
    %c1_i32_2 = arith.constant 1 : i32
    %c0_i32_3 = arith.constant 0 : i32
    %3 = tpu.memref_slice %arg8[%c1_i32_2, %c0_i32_3] : memref<8x128xf32, #tpu.memory_space<any>> -> memref<1x128xf32, #tpu.memory_space<any>>
    %4 = tpu.memref_slice %arg9[%c1_i32] : memref<8x!tpu.dma_semaphore, #tpu.memory_space<semaphore_mem>> -> memref<1x!tpu.dma_semaphore, #tpu.memory_space<semaphore_mem>>
    %5 = tpu.memref_squeeze %4 : memref<1x!tpu.dma_semaphore, #tpu.memory_space<semaphore_mem>> -> memref<!tpu.dma_semaphore, #tpu.memory_space<semaphore_mem>>
    tpu.enqueue_dma source(%arg1 : memref<1x128xf32, #tpu.memory_space<any>>) target(%3 : memref<1x128xf32, #tpu.memory_space<any>>) target_semaphore(%5 : memref<!tpu.dma_semaphore, #tpu.memory_space<semaphore_mem>>)
    %c2_i32 = arith.constant 2 : i32
    %c2_i32_4 = arith.constant 2 : i32
    %c0_i32_5 = arith.constant 0 : i32
    %6 = tpu.memref_slice %arg8[%c2_i32_4, %c0_i32_5] : memref<8x128xf32, #tpu.memory_space<any>> -> memref<1x128xf32, #tpu.memory_space<any>>
    %7 = tpu.memref_slice %arg9[%c2_i32] : memref<8x!tpu.dma_semaphore, #tpu.memory_space<semaphore_mem>> -> memref<1x!tpu.dma_semaphore, #tpu.memory_space<semaphore_mem>>
    %8 = tpu.memref_squeeze %7 : memref<1x!tpu.dma_semaphore, #tpu.memory_space<semaphore_mem>> -> memref<!tpu.dma_semaphore, #tpu.memory_space<semaphore_mem>>
    tpu.enqueue_dma source(%arg2 : memref<1x128xf32, #tpu.memory_space<any>>) target(%6 : memref<1x128xf32, #tpu.memory_space<any>>) target_semaphore(%8 : memref<!tpu.dma_semaphore, #tpu.memory_space<semaphore_mem>>)
    %c3_i32 = arith.constant 3 : i32
    %c3_i32_6 = arith.constant 3 : i32
    %c0_i32_7 = arith.constant 0 : i32
    %9 = tpu.memref_slice %arg8[%c3_i32_6, %c0_i32_7] : memref<8x128xf32, #tpu.memory_space<any>> -> memref<1x128xf32, #tpu.memory_space<any>>
    %10 = tpu.memref_slice %arg9[%c3_i32] : memref<8x!tpu.dma_semaphore, #tpu.memory_space<semaphore_mem>> -> memref<1x!tpu.dma_semaphore, #tpu.memory_space<semaphore_mem>>
    %11 = tpu.memref_squeeze %10 : memref<1x!tpu.dma_semaphore, #tpu.memory_space<semaphore_mem>> -> memref<!tpu.dma_semaphore, #tpu.memory_space<semaphore_mem>>
    tpu.enqueue_dma source(%arg3 : memref<1x128xf32, #tpu.memory_space<any>>) target(%9 : memref<1x128xf32, #tpu.memory_space<any>>) target_semaphore(%11 : memref<!tpu.dma_semaphore, #tpu.memory_space<semaphore_mem>>)
    %c4_i32 = arith.constant 4 : i32
    %c4_i32_8 = arith.constant 4 : i32
    %c0_i32_9 = arith.constant 0 : i32
    %12 = tpu.memref_slice %arg8[%c4_i32_8, %c0_i32_9] : memref<8x128xf32, #tpu.memory_space<any>> -> memref<1x128xf32, #tpu.memory_space<any>>
    %13 = tpu.memref_slice %arg9[%c4_i32] : memref<8x!tpu.dma_semaphore, #tpu.memory_space<semaphore_mem>> -> memref<1x!tpu.dma_semaphore, #tpu.memory_space<semaphore_mem>>
    %14 = tpu.memref_squeeze %13 : memref<1x!tpu.dma_semaphore, #tpu.memory_space<semaphore_mem>> -> memref<!tpu.dma_semaphore, #tpu.memory_space<semaphore_mem>>
    tpu.enqueue_dma source(%arg4 : memref<1x128xf32, #tpu.memory_space<any>>) target(%12 : memref<1x128xf32, #tpu.memory_space<any>>) target_semaphore(%14 : memref<!tpu.dma_semaphore, #tpu.memory_space<semaphore_mem>>)
    %c5_i32 = arith.constant 5 : i32
    %c5_i32_10 = arith.constant 5 : i32
    %c0_i32_11 = arith.constant 0 : i32
    %15 = tpu.memref_slice %arg8[%c5_i32_10, %c0_i32_11] : memref<8x128xf32, #tpu.memory_space<any>> -> memref<1x128xf32, #tpu.memory_space<any>>
    %16 = tpu.memref_slice %arg9[%c5_i32] : memref<8x!tpu.dma_semaphore, #tpu.memory_space<semaphore_mem>> -> memref<1x!tpu.dma_semaphore, #tpu.memory_space<semaphore_mem>>
    %17 = tpu.memref_squeeze %16 : memref<1x!tpu.dma_semaphore, #tpu.memory_space<semaphore_mem>> -> memref<!tpu.dma_semaphore, #tpu.memory_space<semaphore_mem>>
    tpu.enqueue_dma source(%arg5 : memref<1x128xf32, #tpu.memory_space<any>>) target(%15 : memref<1x128xf32, #tpu.memory_space<any>>) target_semaphore(%17 : memref<!tpu.dma_semaphore, #tpu.memory_space<semaphore_mem>>)
    %c6_i32 = arith.constant 6 : i32
    %c6_i32_12 = arith.constant 6 : i32
    %c0_i32_13 = arith.constant 0 : i32
    %18 = tpu.memref_slice %arg8[%c6_i32_12, %c0_i32_13] : memref<8x128xf32, #tpu.memory_space<any>> -> memref<1x128xf32, #tpu.memory_space<any>>
    %19 = tpu.memref_slice %arg9[%c6_i32] : memref<8x!tpu.dma_semaphore, #tpu.memory_space<semaphore_mem>> -> memref<1x!tpu.dma_semaphore, #tpu.memory_space<semaphore_mem>>
    %20 = tpu.memref_squeeze %19 : memref<1x!tpu.dma_semaphore, #tpu.memory_space<semaphore_mem>> -> memref<!tpu.dma_semaphore, #tpu.memory_space<semaphore_mem>>
    tpu.enqueue_dma source(%arg6 : memref<1x128xf32, #tpu.memory_space<any>>) target(%18 : memref<1x128xf32, #tpu.memory_space<any>>) target_semaphore(%20 : memref<!tpu.dma_semaphore, #tpu.memory_space<semaphore_mem>>)
    %c7_i32 = arith.constant 7 : i32
    %c7_i32_14 = arith.constant 7 : i32
    %c0_i32_15 = arith.constant 0 : i32
    %21 = tpu.memref_slice %arg8[%c7_i32_14, %c0_i32_15] : memref<8x128xf32, #tpu.memory_space<any>> -> memref<1x128xf32, #tpu.memory_space<any>>
    %22 = tpu.memref_slice %arg9[%c7_i32] : memref<8x!tpu.dma_semaphore, #tpu.memory_space<semaphore_mem>> -> memref<1x!tpu.dma_semaphore, #tpu.memory_space<semaphore_mem>>
    %23 = tpu.memref_squeeze %22 : memref<1x!tpu.dma_semaphore, #tpu.memory_space<semaphore_mem>> -> memref<!tpu.dma_semaphore, #tpu.memory_space<semaphore_mem>>
    tpu.enqueue_dma source(%arg7 : memref<1x128xf32, #tpu.memory_space<any>>) target(%21 : memref<1x128xf32, #tpu.memory_space<any>>) target_semaphore(%23 : memref<!tpu.dma_semaphore, #tpu.memory_space<semaphore_mem>>)
    %c0_i32_16 = arith.constant 0 : i32
    %c0_i32_17 = arith.constant 0 : i32
    %c0_i32_18 = arith.constant 0 : i32
    %24 = tpu.memref_slice %arg8[%c0_i32_17, %c0_i32_18] : memref<8x128xf32, #tpu.memory_space<any>> -> memref<1x128xf32, #tpu.memory_space<any>>
    %25 = tpu.memref_slice %arg9[%c0_i32_16] : memref<8x!tpu.dma_semaphore, #tpu.memory_space<semaphore_mem>> -> memref<1x!tpu.dma_semaphore, #tpu.memory_space<semaphore_mem>>
    %26 = tpu.memref_squeeze %25 : memref<1x!tpu.dma_semaphore, #tpu.memory_space<semaphore_mem>> -> memref<!tpu.dma_semaphore, #tpu.memory_space<semaphore_mem>>
    tpu.wait_dma2 semaphore(%26 : memref<!tpu.dma_semaphore, #tpu.memory_space<semaphore_mem>>) src(%arg0 : memref<1x128xf32, #tpu.memory_space<any>>) dst(%24 : memref<1x128xf32, #tpu.memory_space<any>>)
    %c1_i32_19 = arith.constant 1 : i32
    %c1_i32_20 = arith.constant 1 : i32
    %c0_i32_21 = arith.constant 0 : i32
    %27 = tpu.memref_slice %arg8[%c1_i32_20, %c0_i32_21] : memref<8x128xf32, #tpu.memory_space<any>> -> memref<1x128xf32, #tpu.memory_space<any>>
    %28 = tpu.memref_slice %arg9[%c1_i32_19] : memref<8x!tpu.dma_semaphore, #tpu.memory_space<semaphore_mem>> -> memref<1x!tpu.dma_semaphore, #tpu.memory_space<semaphore_mem>>
    %29 = tpu.memref_squeeze %28 : memref<1x!tpu.dma_semaphore, #tpu.memory_space<semaphore_mem>> -> memref<!tpu.dma_semaphore, #tpu.memory_space<semaphore_mem>>
    tpu.wait_dma2 semaphore(%29 : memref<!tpu.dma_semaphore, #tpu.memory_space<semaphore_mem>>) src(%arg1 : memref<1x128xf32, #tpu.memory_space<any>>) dst(%27 : memref<1x128xf32, #tpu.memory_space<any>>)
    %c2_i32_22 = arith.constant 2 : i32
    %c2_i32_23 = arith.constant 2 : i32
    %c0_i32_24 = arith.constant 0 : i32
    %30 = tpu.memref_slice %arg8[%c2_i32_23, %c0_i32_24] : memref<8x128xf32, #tpu.memory_space<any>> -> memref<1x128xf32, #tpu.memory_space<any>>
    %31 = tpu.memref_slice %arg9[%c2_i32_22] : memref<8x!tpu.dma_semaphore, #tpu.memory_space<semaphore_mem>> -> memref<1x!tpu.dma_semaphore, #tpu.memory_space<semaphore_mem>>
    %32 = tpu.memref_squeeze %31 : memref<1x!tpu.dma_semaphore, #tpu.memory_space<semaphore_mem>> -> memref<!tpu.dma_semaphore, #tpu.memory_space<semaphore_mem>>
    tpu.wait_dma2 semaphore(%32 : memref<!tpu.dma_semaphore, #tpu.memory_space<semaphore_mem>>) src(%arg2 : memref<1x128xf32, #tpu.memory_space<any>>) dst(%30 : memref<1x128xf32, #tpu.memory_space<any>>)
    %c3_i32_25 = arith.constant 3 : i32
    %c3_i32_26 = arith.constant 3 : i32
    %c0_i32_27 = arith.constant 0 : i32
    %33 = tpu.memref_slice %arg8[%c3_i32_26, %c0_i32_27] : memref<8x128xf32, #tpu.memory_space<any>> -> memref<1x128xf32, #tpu.memory_space<any>>
    %34 = tpu.memref_slice %arg9[%c3_i32_25] : memref<8x!tpu.dma_semaphore, #tpu.memory_space<semaphore_mem>> -> memref<1x!tpu.dma_semaphore, #tpu.memory_space<semaphore_mem>>
    %35 = tpu.memref_squeeze %34 : memref<1x!tpu.dma_semaphore, #tpu.memory_space<semaphore_mem>> -> memref<!tpu.dma_semaphore, #tpu.memory_space<semaphore_mem>>
    tpu.wait_dma2 semaphore(%35 : memref<!tpu.dma_semaphore, #tpu.memory_space<semaphore_mem>>) src(%arg3 : memref<1x128xf32, #tpu.memory_space<any>>) dst(%33 : memref<1x128xf32, #tpu.memory_space<any>>)
    %c4_i32_28 = arith.constant 4 : i32
    %c4_i32_29 = arith.constant 4 : i32
    %c0_i32_30 = arith.constant 0 : i32
    %36 = tpu.memref_slice %arg8[%c4_i32_29, %c0_i32_30] : memref<8x128xf32, #tpu.memory_space<any>> -> memref<1x128xf32, #tpu.memory_space<any>>
    %37 = tpu.memref_slice %arg9[%c4_i32_28] : memref<8x!tpu.dma_semaphore, #tpu.memory_space<semaphore_mem>> -> memref<1x!tpu.dma_semaphore, #tpu.memory_space<semaphore_mem>>
    %38 = tpu.memref_squeeze %37 : memref<1x!tpu.dma_semaphore, #tpu.memory_space<semaphore_mem>> -> memref<!tpu.dma_semaphore, #tpu.memory_space<semaphore_mem>>
    tpu.wait_dma2 semaphore(%38 : memref<!tpu.dma_semaphore, #tpu.memory_space<semaphore_mem>>) src(%arg4 : memref<1x128xf32, #tpu.memory_space<any>>) dst(%36 : memref<1x128xf32, #tpu.memory_space<any>>)
    %c5_i32_31 = arith.constant 5 : i32
    %c5_i32_32 = arith.constant 5 : i32
    %c0_i32_33 = arith.constant 0 : i32
    %39 = tpu.memref_slice %arg8[%c5_i32_32, %c0_i32_33] : memref<8x128xf32, #tpu.memory_space<any>> -> memref<1x128xf32, #tpu.memory_space<any>>
    %40 = tpu.memref_slice %arg9[%c5_i32_31] : memref<8x!tpu.dma_semaphore, #tpu.memory_space<semaphore_mem>> -> memref<1x!tpu.dma_semaphore, #tpu.memory_space<semaphore_mem>>
    %41 = tpu.memref_squeeze %40 : memref<1x!tpu.dma_semaphore, #tpu.memory_space<semaphore_mem>> -> memref<!tpu.dma_semaphore, #tpu.memory_space<semaphore_mem>>
    tpu.wait_dma2 semaphore(%41 : memref<!tpu.dma_semaphore, #tpu.memory_space<semaphore_mem>>) src(%arg5 : memref<1x128xf32, #tpu.memory_space<any>>) dst(%39 : memref<1x128xf32, #tpu.memory_space<any>>)
    %c6_i32_34 = arith.constant 6 : i32
    %c6_i32_35 = arith.constant 6 : i32
    %c0_i32_36 = arith.constant 0 : i32
    %42 = tpu.memref_slice %arg8[%c6_i32_35, %c0_i32_36] : memref<8x128xf32, #tpu.memory_space<any>> -> memref<1x128xf32, #tpu.memory_space<any>>
    %43 = tpu.memref_slice %arg9[%c6_i32_34] : memref<8x!tpu.dma_semaphore, #tpu.memory_space<semaphore_mem>> -> memref<1x!tpu.dma_semaphore, #tpu.memory_space<semaphore_mem>>
    %44 = tpu.memref_squeeze %43 : memref<1x!tpu.dma_semaphore, #tpu.memory_space<semaphore_mem>> -> memref<!tpu.dma_semaphore, #tpu.memory_space<semaphore_mem>>
    tpu.wait_dma2 semaphore(%44 : memref<!tpu.dma_semaphore, #tpu.memory_space<semaphore_mem>>) src(%arg6 : memref<1x128xf32, #tpu.memory_space<any>>) dst(%42 : memref<1x128xf32, #tpu.memory_space<any>>)
    %c7_i32_37 = arith.constant 7 : i32
    %c7_i32_38 = arith.constant 7 : i32
    %c0_i32_39 = arith.constant 0 : i32
    %45 = tpu.memref_slice %arg8[%c7_i32_38, %c0_i32_39] : memref<8x128xf32, #tpu.memory_space<any>> -> memref<1x128xf32, #tpu.memory_space<any>>
    %46 = tpu.memref_slice %arg9[%c7_i32_37] : memref<8x!tpu.dma_semaphore, #tpu.memory_space<semaphore_mem>> -> memref<1x!tpu.dma_semaphore, #tpu.memory_space<semaphore_mem>>
    %47 = tpu.memref_squeeze %46 : memref<1x!tpu.dma_semaphore, #tpu.memory_space<semaphore_mem>> -> memref<!tpu.dma_semaphore, #tpu.memory_space<semaphore_mem>>
    tpu.wait_dma2 semaphore(%47 : memref<!tpu.dma_semaphore, #tpu.memory_space<semaphore_mem>>) src(%arg7 : memref<1x128xf32, #tpu.memory_space<any>>) dst(%45 : memref<1x128xf32, #tpu.memory_space<any>>)
    return
  }
}

</mosaic_0001>

<bundles_post_ra>
// kernel: tpu_custom_call.1
= control target key start
LH: loop header
LB: loop body
LE: loop exit
PB: predicated region body
PF: predicated region fallthrough
CT: control target
= control target key end

     0   :  { %s372_s14 = smov [#allocation2]   ;;  %s373_s15 = smov [#allocation3]   ;;  %s470_s0 = inlined_call_operand.hbm [shape: f32[1,128], index: 0, kind: input, shape index: {}]   ;;  %s471_s8 = inlined_call_operand.hbm [shape: f32[8,128], index: 8, kind: output, shape index: {}]   ;;  %s472_s1 = inlined_call_operand.hbm [shape: f32[1,128], index: 1, kind: input, shape index: {}]   ;;  %s473_s2 = inlined_call_operand.vmem [shape: f32[1,128], index: 2, kind: input, shape index: {}]   ;;  %s474_s3 = inlined_call_operand.vmem [shape: f32[1,128], index: 3, kind: input, shape index: {}]   ;;  %s475_s4 = inlined_call_operand.vmem [shape: f32[1,128], index: 4, kind: input, shape index: {}]   ;;  %s476_s5 = inlined_call_operand.vmem [shape: f32[1,128], index: 5, kind: input, shape index: {}]   ;;  %s477_s6 = inlined_call_operand.vmem [shape: f32[1,128], index: 6, kind: input, shape index: {}]   ;;  %s478_s7 = inlined_call_operand.vmem [shape: f32[1,128], index: 7, kind: input, shape index: {}]  }
   0x1   :  { %s17_s29 = sshll.u32 %s470_s0, 4  ;;  %s19_s10 = sshll.u32 %s471_s8, 4  ;;  %s18_s29 = int_to_ptr.hbm [resolvable:$true] %s17_s29  ;;  %s20_s10 = int_to_ptr.hbm [resolvable:$true] %s19_s10 }
   0x2   :  { %s24_s13 = scalar_lea.hbm %s471_s8, 1  ;;  %s374_s16 = smov 0  }
   0x3   :  { %23 = dma.general %s18_s29, 16, %s20_s10, %s372_s14, %s373_s15, [#allocation4], %s374_s16, 0  }
   0x4   :  { %s30_s19 = sshll.u32 %s472_s1, 4  ;;  %s32_s20 = sshll.u32 %s24_s13, 4  ;;  %s31_s19 = int_to_ptr.hbm [resolvable:$true] %s30_s19  ;;  %s33_s20 = int_to_ptr.hbm [resolvable:$true] %s32_s20 }
   0x5   :  { %s375_s0 = smov [#allocation2 + $0x1]   ;;  %s376_s21 = smov [#allocation5]  }
   0x6   :  { %36 = dma.general %s31_s19, 16, %s33_s20, %s375_s0, %s376_s21, [#allocation6], %s374_s16, 0  }
   0x7   :  { %s37_s24 = scalar_lea.hbm %s471_s8, 2  ;;  %s46_s27 = sshll.u32 %s473_s2, 4  ;;  %s47_s27 = int_to_ptr.vmem [resolvable:$true] %s46_s27 }
   0x8   :  { %s48_s28 = sshll.u32 %s37_s24, 4  ;;  %s52_s1 = scalar_lea.hbm %s471_s8, 3  ;;  %s49_s28 = int_to_ptr.hbm [resolvable:$true] %s48_s28 }
   0x9   :  { %51 = dma.vmem_to_hbm [thread:$0]  %s47_s27, 16, %s49_s28, [#allocation2 + $0x2] }
   0xa   :  { %s61_s11 = sshll.u32 %s474_s3, 4  ;;  %s63_s12 = sshll.u32 %s52_s1, 4  ;;  %s62_s11 = int_to_ptr.vmem [resolvable:$true] %s61_s11  ;;  %s64_s12 = int_to_ptr.hbm [resolvable:$true] %s63_s12 }
   0xb   :  { %66 = dma.vmem_to_hbm [thread:$0]  %s62_s11, 16, %s64_s12, [#allocation2 + $0x3] }
   0xc   :  { %s67_s2 = scalar_lea.hbm %s471_s8, 4  ;;  %s76_s17 = sshll.u32 %s475_s4, 4  ;;  %s77_s17 = int_to_ptr.vmem [resolvable:$true] %s76_s17 }
   0xd   :  { %s78_s18 = sshll.u32 %s67_s2, 4  ;;  %s82_s0 = scalar_lea.hbm %s471_s8, 5  ;;  %s79_s18 = int_to_ptr.hbm [resolvable:$true] %s78_s18 }
   0xe   :  { %81 = dma.vmem_to_hbm [thread:$0]  %s77_s17, 16, %s79_s18, [#allocation2 + $0x4] }
   0xf   :  { %s91_s22 = sshll.u32 %s476_s5, 4  ;;  %s93_s23 = sshll.u32 %s82_s0, 4  ;;  %s92_s22 = int_to_ptr.vmem [resolvable:$true] %s91_s22  ;;  %s94_s23 = int_to_ptr.hbm [resolvable:$true] %s93_s23 }
  0x10   :  { %96 = dma.vmem_to_hbm [thread:$0]  %s92_s22, 16, %s94_s23, [#allocation2 + $0x5] }
  0x11   :  { %s97_s4 = scalar_lea.hbm %s471_s8, 6  ;;  %s106_s28 = sshll.u32 %s477_s6, 4  ;;  %s107_s28 = int_to_ptr.vmem [resolvable:$true] %s106_s28 }
  0x12   :  { %s108_s29 = sshll.u32 %s97_s4, 4  ;;  %s112_s9 = scalar_lea.hbm %s471_s8, 7  ;;  %s109_s29 = int_to_ptr.hbm [resolvable:$true] %s108_s29 }
  0x13   :  { %111 = dma.vmem_to_hbm [thread:$0]  %s107_s28, 16, %s109_s29, [#allocation2 + $0x6] }
  0x14   :  { %s121_s11 = sshll.u32 %s478_s7, 4  ;;  %s123_s12 = sshll.u32 %s112_s9, 4  ;;  %s122_s11 = int_to_ptr.vmem [resolvable:$true] %s121_s11  ;;  %s124_s12 = int_to_ptr.hbm [resolvable:$true] %s123_s12 }
  0x15   :  { %126 = dma.vmem_to_hbm [thread:$0]  %s122_s11, 16, %s124_s12, [#allocation2 + $0x7] }
  0x16   :  { %356 = dma.done.wait [#allocation2], 16 }
  0x17   :  { %357 = vsyncadd [#allocation2], 4294967280 }
  0x18   :  { %358 = dma.done.wait [#allocation2 + $0x1], 16 }
  0x19   :  { %359 = vsyncadd [#allocation2 + $0x1], 4294967280 }
  0x1a   :  { %360 = dma.done.wait [#allocation2 + $0x2], 16 }
  0x1b   :  { %361 = vsyncadd [#allocation2 + $0x2], 4294967280 }
  0x1c   :  { %362 = dma.done.wait [#allocation2 + $0x3], 16 }
  0x1d   :  { %363 = vsyncadd [#allocation2 + $0x3], 4294967280 }
  0x1e   :  { %364 = dma.done.wait [#allocation2 + $0x4], 16 }
  0x1f   :  { %365 = vsyncadd [#allocation2 + $0x4], 4294967280 }
  0x20   :  { %366 = dma.done.wait [#allocation2 + $0x5], 16 }
  0x21   :  { %367 = vsyncadd [#allocation2 + $0x5], 4294967280 }
  0x22   :  { %368 = dma.done.wait [#allocation2 + $0x6], 16 }
  0x23   :  { %369 = vsyncadd [#allocation2 + $0x6], 4294967280 }
  0x24   :  { %370 = dma.done.wait [#allocation2 + $0x7], 16 }
  0x25   :  { %371 = vsyncadd [#allocation2 + $0x7], 4294967280 }
  0x26   :  { %144 = vsyncmov [#allocation2] }
  0x29   :  { %s145_s6 = vpop.sfrf %144 }
  0x2a   :  { %p199_p0 = scmp.ne.s32.totalorder %s145_s6, 0 }
  0x2c   :  { %149 = shalt.err (%p199_p0)  }
  0x2d   :  { %151 = vsyncmov [#allocation2 + $0x1] }
  0x30   :  { %s152_s7 = vpop.sfrf %151 }
  0x31   :  { %p200_p1 = scmp.ne.s32.totalorder %s152_s7, 0 }
  0x33   :  { %156 = shalt.err (%p200_p1)  }
  0x34   :  { %158 = vsyncmov [#allocation2 + $0x2] }
  0x37   :  { %s159_s8 = vpop.sfrf %158 }
  0x38   :  { %p201_p2 = scmp.ne.s32.totalorder %s159_s8, 0 }
  0x3a   :  { %163 = shalt.err (%p201_p2)  }
  0x3b   :  { %165 = vsyncmov [#allocation2 + $0x3] }
  0x3e   :  { %s166_s13 = vpop.sfrf %165 }
  0x3f   :  { %p202_p3 = scmp.ne.s32.totalorder %s166_s13, 0 }
  0x41   :  { %170 = shalt.err (%p202_p3)  }
  0x42   :  { %172 = vsyncmov [#allocation2 + $0x4] }
  0x45   :  { %s173_s14 = vpop.sfrf %172 }
  0x46   :  { %p203_p4 = scmp.ne.s32.totalorder %s173_s14, 0 }
  0x48   :  { %177 = shalt.err (%p203_p4)  }
  0x49   :  { %179 = vsyncmov [#allocation2 + $0x5] }
  0x4c   :  { %s180_s2 = vpop.sfrf %179 }
  0x4d   :  { %p204_p5 = scmp.ne.s32.totalorder %s180_s2, 0 }
  0x4f   :  { %184 = shalt.err (%p204_p5)  }
  0x50   :  { %186 = vsyncmov [#allocation2 + $0x6] }
  0x53   :  { %s187_s15 = vpop.sfrf %186 }
  0x54   :  { %p205_p6 = scmp.ne.s32.totalorder %s187_s15, 0 }
  0x56   :  { %191 = shalt.err (%p205_p6)  }
  0x57   :  { %193 = vsyncmov [#allocation2 + $0x7] }
  0x5a   :  { %s194_s16 = vpop.sfrf %193 }
  0x5b   :  { %p206_p7 = scmp.ne.s32.totalorder %s194_s16, 0 }
  0x5d   :  { %198 = shalt.err (%p206_p7)  }

</bundles_post_ra>
